<compile_context>
chip_gen: v7x
topology: tpu7x:2x2x1
jax: 0.10.0
libtpu: 0.0.40
codegen_flags: <defaults>
</compile_context>

<pallas_src>
import functools
import math

import jax
import jax.numpy as jnp
from jax.experimental import pallas as pl
from jax.experimental.pallas import tpu as pltpu


# ---------------------------------------------------------------------------
# Fused kernel: 4-tap conv-as-matmul + BN(eval) affine + LeakyReLU epilogue.
# One grid step = one batch image.
# ---------------------------------------------------------------------------
def _down_conv_kernel(xs_ref, w_ref, scale_ref, shift_ref, o_ref, *,
                      oh, ow, neg_slope):
    """Refs:
       xs_ref   : (1, oh+1, ow+1, 4*cin)  reflect-padded, space-to-depth input (bf16)
       w_ref    : (4, 4*cin, cout)        per-tap weight matrices (bf16)
       scale_ref: (1, cout)               folded BN scale (f32)
       shift_ref: (1, cout)               folded BN shift (f32)
       o_ref    : (1, oh*ow, cout)        output block
    """
    acc = None
    # Static 4-tap loop: output(i, j) += xs[i+qh, j+qw, :] @ W[(qh, qw)].
    for q in range(4):
        qh, qw = q // 2, q % 2
        xt = xs_ref[0, pl.ds(qh, oh), pl.ds(qw, ow), :]          # (oh, ow, 4cin)
        xt = xt.reshape(oh * ow, xt.shape[-1])                   # (M, K) lane-dense K
        p = jnp.dot(xt, w_ref[q], preferred_element_type=jnp.float32)
        acc = p if acc is None else acc + p                      # f32 accumulation
    # Fused eval-BatchNorm affine + LeakyReLU(0.2) epilogue in f32.
    y = acc * scale_ref[...] + shift_ref[...]
    y = jnp.where(y >= 0, y, neg_slope * y)
    o_ref[0] = y.astype(o_ref.dtype)


# ---------------------------------------------------------------------------
# DownConvLayer forward (eval-mode BatchNorm semantics: running stats)
# ---------------------------------------------------------------------------
def down_conv_layer(x, w, bn_gamma, bn_beta, bn_mean, bn_var, *, eps=1e-5,
                    neg_slope=0.2, compute_dtype=jnp.bfloat16,
                    out_dtype=jnp.float32):
    """PyTorch DownConvLayer.forward:
       Conv2d(Cin, Cout, k=4, s=2, p=1, padding_mode='reflect', bias=False)
       -> BatchNorm2d(Cout) -> LeakyReLU(0.2).  x is NCHW, returns NCHW.
       (Keep the surrounding net NHWC / pass out_dtype=bfloat16 to drop the boundary
        transpose / halve output writeback when the consumer allows.)"""
    n, cin, h, wdt = x.shape
    cout = w.shape[0]
    assert w.shape == (cout, cin, 4, 4)
    assert h % 2 == 0 and wdt % 2 == 0
    oh, ow = h // 2, wdt // 2
    c4 = 4 * cin

    # --- activation pre-pass: ONE cheap HBM pass (bf16), no 4x im2col ------------
    # cast early (halves every subsequent copy) -> NHWC -> reflect pad -> stride-2
    # space-to-depth so each of the 4 remaining taps is a contiguous window.
    xb = x.astype(compute_dtype)
    x_nhwc = jnp.transpose(xb, (0, 2, 3, 1))                       # (n, h, w, cin)
    xp = jnp.pad(x_nhwc, ((0, 0), (1, 1), (1, 1), (0, 0)), mode="reflect")
    xs = xp.reshape(n, oh + 1, 2, ow + 1, 2, cin)                  # (n,a,ph,b,pw,c)
    xs = jnp.transpose(xs, (0, 1, 3, 2, 4, 5)).reshape(n, oh + 1, ow + 1, c4)

    # --- weights: (cout, cin, 4, 4) -> 4 per-tap (4*cin, cout) matrices ----------
    # kh = 2*qh + ph, kw = 2*qw + pw; channel order (ph, pw, cin) matches xs.
    wt = jnp.transpose(w, (2, 3, 1, 0)).reshape(2, 2, 2, 2, cin, cout)  # (qh,ph,qw,pw,ci,co)
    w_taps = jnp.transpose(wt, (0, 2, 1, 3, 4, 5)).reshape(4, c4, cout)
    w_taps = w_taps.astype(compute_dtype)

    # --- eval-mode BatchNorm folded into a per-channel affine (f32 epilogue) -----
    scale_v = (bn_gamma / jnp.sqrt(bn_var + eps)).astype(jnp.float32)
    shift_v = (bn_beta.astype(jnp.float32) - bn_mean.astype(jnp.float32) * scale_v)
    scale_p = scale_v.reshape(1, cout)
    shift_p = shift_v.reshape(1, cout)

    # TODO(synk): for very large per-image slabs (big spatial * big cin), tile output
    # rows with memory_space=pl.ANY + manual double-buffered make_async_copy of the
    # overlapping (rows+1) window instead of one whole-image block.
    kernel = functools.partial(_down_conv_kernel, oh=oh, ow=ow, neg_slope=neg_slope)
    y = pl.pallas_call(
        kernel,
        out_shape=jax.ShapeDtypeStruct((n, oh * ow, cout), out_dtype),
        grid_spec=pltpu.PrefetchScalarGridSpec(
            num_scalar_prefetch=0,
            grid=(n,),                                   # >=2 parallel steps feeds both v7x TCs
            in_specs=[
                pl.BlockSpec((1, oh + 1, ow + 1, c4), lambda b: (b, 0, 0, 0)),
                pl.BlockSpec((4, c4, cout), lambda b: (0, 0, 0)),
                pl.BlockSpec((1, cout), lambda b: (0, 0)),
                pl.BlockSpec((1, cout), lambda b: (0, 0)),
            ],
            out_specs=pl.BlockSpec((1, oh * ow, cout), lambda b: (b, 0, 0)),
        ),
        compiler_params=pltpu.CompilerParams(
            dimension_semantics=("parallel",),
            # Below v7x's 64 MiB physical VMEM; above the scoped defaults so large
            # per-image slabs still double-buffer on v5e/v6e (128 MiB).
            vmem_limit_bytes=48 * 1024 * 1024,
        ),
    )(xs, w_taps, scale_p, shift_p)

    y = y.reshape(n, oh, ow, cout)
    return jnp.transpose(y, (0, 3, 1, 2))                # NCHW at the module boundary


# ---------------------------------------------------------------------------
# Pure-JAX f32 reference (same math as the PyTorch module in eval mode)
# ---------------------------------------------------------------------------
def down_conv_layer_ref(x, w, bn_gamma, bn_beta, bn_mean, bn_var, *, eps=1e-5,
                        neg_slope=0.2):
    xp = jnp.pad(x, ((0, 0), (0, 0), (1, 1), (1, 1)), mode="reflect")
    y = jax.lax.conv_general_dilated(
        xp, w, window_strides=(2, 2), padding="VALID",
        dimension_numbers=("NCHW", "OIHW", "NCHW"))
    scale = (bn_gamma / jnp.sqrt(bn_var + eps)).reshape(1, -1, 1, 1)
    shift = (bn_beta - bn_mean * bn_gamma / jnp.sqrt(bn_var + eps)).reshape(1, -1, 1, 1)
    y = y * scale + shift
    return jnp.where(y >= 0, y, neg_slope * y)


if __name__ == "__main__":
    key = jax.random.PRNGKey(0)
    k_x, k_w, k_g, k_b, k_m, k_v = jax.random.split(key, 6)

    # Small shapes consistent with DownConvLayer: batch=2, Cin=4, Cout=8, 16x16 spatial.
    N, CIN, COUT, H, W = 2, 4, 8, 16, 16
    x = jax.random.normal(k_x, (N, CIN, H, W), jnp.float32)
    w = jax.random.normal(k_w, (COUT, CIN, 4, 4), jnp.float32) / math.sqrt(CIN * 16)
    bn_gamma = 1.0 + 0.1 * jax.random.normal(k_g, (COUT,), jnp.float32)
    bn_beta = 0.1 * jax.random.normal(k_b, (COUT,), jnp.float32)
    bn_mean = 0.1 * jax.random.normal(k_m, (COUT,), jnp.float32)
    bn_var = 1.0 + 0.1 * jax.random.uniform(k_v, (COUT,), jnp.float32)

    fwd = jax.jit(down_conv_layer)
    out = jax.block_until_ready(fwd(x, w, bn_gamma, bn_beta, bn_mean, bn_var))

    assert out.shape == (N, COUT, H // 2, W // 2), out.shape
    assert bool(jnp.all(jnp.isfinite(out)))

    ref = down_conv_layer_ref(x, w, bn_gamma, bn_beta, bn_mean, bn_var)
    max_err = float(jnp.max(jnp.abs(out - ref)))
    # bf16 MXU operands + f32 accumulation vs. the all-f32 reference.
    assert max_err < 6e-2, max_err

    print("KERNEL_OK")
</pallas_src>

<mosaic_0001>
module attributes {stable_mosaic.version = 11 : i64} {
  func.func @_down_conv_kernel(%arg0: i32, %arg1: memref<1x9x9x16xbf16, #tpu.memory_space<vmem>>, %arg2: memref<4x16x8xbf16, #tpu.memory_space<vmem>>, %arg3: memref<1x8xf32, #tpu.memory_space<vmem>>, %arg4: memref<1x8xf32, #tpu.memory_space<vmem>>, %arg5: memref<1x64x8xf32, #tpu.memory_space<vmem>>) attributes {dimension_semantics = [#tpu.dimension_semantics<parallel>], iteration_bounds = array<i64: 2>, scalar_prefetch = 0 : i64, scratch_operands = 0 : i64, tpu.core_type = #tpu.core_type<tc>, window_params = [{transform_indices = @transform_0, window_bounds = array<i64: 1, 9, 9, 16>}, {pipeline_mode = #tpu.pipeline_mode<synchronous>, transform_indices = @transform_1, window_bounds = array<i64: 4, 16, 8>}, {pipeline_mode = #tpu.pipeline_mode<synchronous>, transform_indices = @transform_2, window_bounds = array<i64: 1, 8>}, {pipeline_mode = #tpu.pipeline_mode<synchronous>, transform_indices = @transform_3, window_bounds = array<i64: 1, 8>}, {transform_indices = @transform_4, window_bounds = array<i64: 1, 64, 8>}]} {
    %c0 = arith.constant 0 : index
    %c0_0 = arith.constant 0 : index
    %c0_1 = arith.constant 0 : index
    %c0_2 = arith.constant 0 : index
    %0 = vector.load %arg1[%c0, %c0_0, %c0_1, %c0_2] : memref<1x9x9x16xbf16, #tpu.memory_space<vmem>>, vector<1x8x8x16xbf16>
    %1 = vector.shape_cast %0 : vector<1x8x8x16xbf16> to vector<8x8x16xbf16>
    %2 = vector.shape_cast %1 : vector<8x8x16xbf16> to vector<64x16xbf16>
    %c0_3 = arith.constant 0 : index
    %c0_4 = arith.constant 0 : index
    %c0_5 = arith.constant 0 : index
    %3 = vector.load %arg2[%c0_3, %c0_4, %c0_5] : memref<4x16x8xbf16, #tpu.memory_space<vmem>>, vector<1x16x8xbf16>
    %4 = vector.shape_cast %3 : vector<1x16x8xbf16> to vector<16x8xbf16>
    %cst = arith.constant dense<0.000000e+00> : vector<64x8xf32>
    %5 = tpu.matmul %2, %4, %cst {dimension_numbers = #tpu.dot_dimension_numbers<[1], [0], [0], [1], [0, 0, 1, 1], [], []>} : vector<64x16xbf16>, vector<16x8xbf16>, vector<64x8xf32> -> vector<64x8xf32>
    %c0_6 = arith.constant 0 : index
    %c0_7 = arith.constant 0 : index
    %c1 = arith.constant 1 : index
    %c0_8 = arith.constant 0 : index
    %6 = vector.load %arg1[%c0_6, %c0_7, %c1, %c0_8] : memref<1x9x9x16xbf16, #tpu.memory_space<vmem>>, vector<1x8x8x16xbf16>
    %7 = vector.shape_cast %6 : vector<1x8x8x16xbf16> to vector<8x8x16xbf16>
    %8 = vector.shape_cast %7 : vector<8x8x16xbf16> to vector<64x16xbf16>
    %c1_9 = arith.constant 1 : index
    %c0_10 = arith.constant 0 : index
    %c0_11 = arith.constant 0 : index
    %9 = vector.load %arg2[%c1_9, %c0_10, %c0_11] : memref<4x16x8xbf16, #tpu.memory_space<vmem>>, vector<1x16x8xbf16>
    %10 = vector.shape_cast %9 : vector<1x16x8xbf16> to vector<16x8xbf16>
    %cst_12 = arith.constant dense<0.000000e+00> : vector<64x8xf32>
    %11 = tpu.matmul %8, %10, %cst_12 {dimension_numbers = #tpu.dot_dimension_numbers<[1], [0], [0], [1], [0, 0, 1, 1], [], []>} : vector<64x16xbf16>, vector<16x8xbf16>, vector<64x8xf32> -> vector<64x8xf32>
    %12 = arith.addf %5, %11 : vector<64x8xf32>
    %c0_13 = arith.constant 0 : index
    %c1_14 = arith.constant 1 : index
    %c0_15 = arith.constant 0 : index
    %c0_16 = arith.constant 0 : index
    %13 = vector.load %arg1[%c0_13, %c1_14, %c0_15, %c0_16] : memref<1x9x9x16xbf16, #tpu.memory_space<vmem>>, vector<1x8x8x16xbf16>
    %14 = vector.shape_cast %13 : vector<1x8x8x16xbf16> to vector<8x8x16xbf16>
    %15 = vector.shape_cast %14 : vector<8x8x16xbf16> to vector<64x16xbf16>
    %c2 = arith.constant 2 : index
    %c0_17 = arith.constant 0 : index
    %c0_18 = arith.constant 0 : index
    %16 = vector.load %arg2[%c2, %c0_17, %c0_18] : memref<4x16x8xbf16, #tpu.memory_space<vmem>>, vector<1x16x8xbf16>
    %17 = vector.shape_cast %16 : vector<1x16x8xbf16> to vector<16x8xbf16>
    %cst_19 = arith.constant dense<0.000000e+00> : vector<64x8xf32>
    %18 = tpu.matmul %15, %17, %cst_19 {dimension_numbers = #tpu.dot_dimension_numbers<[1], [0], [0], [1], [0, 0, 1, 1], [], []>} : vector<64x16xbf16>, vector<16x8xbf16>, vector<64x8xf32> -> vector<64x8xf32>
    %19 = arith.addf %12, %18 : vector<64x8xf32>
    %c0_20 = arith.constant 0 : index
    %c1_21 = arith.constant 1 : index
    %c1_22 = arith.constant 1 : index
    %c0_23 = arith.constant 0 : index
    %20 = vector.load %arg1[%c0_20, %c1_21, %c1_22, %c0_23] : memref<1x9x9x16xbf16, #tpu.memory_space<vmem>>, vector<1x8x8x16xbf16>
    %21 = vector.shape_cast %20 : vector<1x8x8x16xbf16> to vector<8x8x16xbf16>
    %22 = vector.shape_cast %21 : vector<8x8x16xbf16> to vector<64x16xbf16>
    %c3 = arith.constant 3 : index
    %c0_24 = arith.constant 0 : index
    %c0_25 = arith.constant 0 : index
    %23 = vector.load %arg2[%c3, %c0_24, %c0_25] : memref<4x16x8xbf16, #tpu.memory_space<vmem>>, vector<1x16x8xbf16>
    %24 = vector.shape_cast %23 : vector<1x16x8xbf16> to vector<16x8xbf16>
    %cst_26 = arith.constant dense<0.000000e+00> : vector<64x8xf32>
    %25 = tpu.matmul %22, %24, %cst_26 {dimension_numbers = #tpu.dot_dimension_numbers<[1], [0], [0], [1], [0, 0, 1, 1], [], []>} : vector<64x16xbf16>, vector<16x8xbf16>, vector<64x8xf32> -> vector<64x8xf32>
    %26 = arith.addf %19, %25 : vector<64x8xf32>
    %c0_27 = arith.constant 0 : index
    %c0_28 = arith.constant 0 : index
    %27 = vector.load %arg3[%c0_27, %c0_28] : memref<1x8xf32, #tpu.memory_space<vmem>>, vector<1x8xf32>
    %28 = vector.broadcast %27 : vector<1x8xf32> to vector<64x8xf32>
    %29 = arith.mulf %26, %28 : vector<64x8xf32>
    %c0_29 = arith.constant 0 : index
    %c0_30 = arith.constant 0 : index
    %30 = vector.load %arg4[%c0_29, %c0_30] : memref<1x8xf32, #tpu.memory_space<vmem>>, vector<1x8xf32>
    %31 = vector.broadcast %30 : vector<1x8xf32> to vector<64x8xf32>
    %32 = arith.addf %29, %31 : vector<64x8xf32>
    %cst_31 = arith.constant 0.000000e+00 : f32
    %33 = vector.broadcast %cst_31 : f32 to vector<64x8xf32>
    %34 = arith.cmpf oge, %32, %33 : vector<64x8xf32>
    %cst_32 = arith.constant 2.000000e-01 : f32
    %35 = vector.broadcast %cst_32 : f32 to vector<64x8xf32>
    %36 = arith.mulf %35, %32 : vector<64x8xf32>
    %37 = arith.select %34, %32, %36 : vector<64x8xi1>, vector<64x8xf32>
    %c0_33 = arith.constant 0 : index
    %c0_34 = arith.constant 0 : index
    %c0_35 = arith.constant 0 : index
    %38 = vector.load %arg5[%c0_33, %c0_34, %c0_35] : memref<1x64x8xf32, #tpu.memory_space<vmem>>, vector<1x64x8xf32>
    %39 = vector.shape_cast %38 : vector<1x64x8xf32> to vector<64x8xf32>
    %40 = vector.shape_cast %37 : vector<64x8xf32> to vector<1x64x8xf32>
    tpu.vector_store %arg5[%c0_33, %c0_34, %c0_35], %40 {strides = array<i32>} : memref<1x64x8xf32, #tpu.memory_space<vmem>>, vector<1x64x8xf32>,
    return
  }
  func.func @transform_0(%arg0: i32) -> (i32, i32, i32, i32) {
    %c0_i32 = arith.constant 0 : i32
    %c0_i32_0 = arith.constant 0 : i32
    %c0_i32_1 = arith.constant 0 : i32
    %c0_i32_2 = arith.constant 0 : i32
    return %arg0, %c0_i32, %c0_i32_0, %c0_i32_1 : i32, i32, i32, i32
  }
  func.func @transform_1(%arg0: i32) -> (i32, i32, i32) {
    %c0_i32 = arith.constant 0 : i32
    %c0_i32_0 = arith.constant 0 : i32
    %c0_i32_1 = arith.constant 0 : i32
    %c0_i32_2 = arith.constant 0 : i32
    return %c0_i32, %c0_i32_0, %c0_i32_1 : i32, i32, i32
  }
  func.func @transform_2(%arg0: i32) -> (i32, i32) {
    %c0_i32 = arith.constant 0 : i32
    %c0_i32_0 = arith.constant 0 : i32
    %c0_i32_1 = arith.constant 0 : i32
    return %c0_i32, %c0_i32_0 : i32, i32
  }
  func.func @transform_3(%arg0: i32) -> (i32, i32) {
    %c0_i32 = arith.constant 0 : i32
    %c0_i32_0 = arith.constant 0 : i32
    %c0_i32_1 = arith.constant 0 : i32
    return %c0_i32, %c0_i32_0 : i32, i32
  }
  func.func @transform_4(%arg0: i32) -> (i32, i32, i32) {
    %c0_i32 = arith.constant 0 : i32
    %c0_i32_0 = arith.constant 0 : i32
    %c0_i32_1 = arith.constant 0 : i32
    return %arg0, %c0_i32, %c0_i32_0 : i32, i32, i32
  }
}

</mosaic_0001>

<bundles_post_ra>
// kernel: down_conv_layer.1
= control target key start
LH: loop header
LB: loop body
LE: loop exit
PB: predicated region body
PF: predicated region fallthrough
CT: control target
= control target key end

     0   :  { %s1226_s15 = smov 0   ;;  %s1419_s0 = inlined_call_operand.vmem [shape: bf16[2,9,9,16], index: 0, kind: input, shape index: {}]   ;;  %s1420_s1 = inlined_call_operand.vmem [shape: bf16[4,16,8], index: 1, kind: input, shape index: {}]   ;;  %s1421_s2 = inlined_call_operand.vmem [shape: f32[1,8], index: 2, kind: input, shape index: {}]   ;;  %s1422_s3 = inlined_call_operand.vmem [shape: f32[1,8], index: 3, kind: input, shape index: {}]   ;;  %s1423_s4 = inlined_call_operand.vmem [shape: f32[2,64,8], index: 4, kind: output, shape index: {}]  }
   0x1 LB: > { %s1009_s16 = sadd.s32 4294967295, %s1199_s15   ;;  %p1013_p0 = scmp.ge.s32.totalorder %s1199_s15, 1  ;;  %s1199_s15 = sphi %s1226_s15, %s14_s15  }
   0x2   : > { %p162_p1 = scmp.lt.s32.totalorder %s1199_s15, 3 }
   0x4   : > { %p163_p2 = pnand %p1013_p0, %p162_p1 }
   0x5   : > { %v1181_v0 = vld [vmem:[%s1420_s1 + $0x10] sm:$0xff] (!%p163_p2)   ;;  %p188_p3 = scmp.lt.s32.totalorder (!%p163_p2), %s1009_s16, 1  ;;  %v1184_v1 = vld [vmem:[%s1420_s1 + $0x8] sm:$0xff] (!%p163_p2)   ;;  %v1245_v2 = vld [vmem:[%s1420_s1] sm:$0xff] (!%p163_p2)   ;;  %vm353_vm0 = vcmask (!%p163_p2), 130048   ;;  %vm945_vm5 = vcmask (!%p163_p2), 64512  }
   0x6   : > { %166 = sbr.rel (%p163_p2) target bundleno = 297 (0x129), region = 36  ;;  %1128 = vmatprep.subr.bf16.mxu0 (!%p163_p2), %v1181_v0  ;;  %1108 = vmatprep.subr.bf16.mxu1 (!%p163_p2), %v1184_v1  ;;  %v1188_v3 = vld [vmem:[%s1420_s1 + $0x18] sm:$0xff] (!%p163_p2)   ;;  %vm217_vm1 = vsmask.f32 (!%p163_p2), 3328  ;;  %vm218_vm2 = vsmask.f32 (!%p163_p2), 7440 }
   0x7   : > { %1129 = vmatpush3.bf16.msra.mxu0 (!%p163_p2), %v1181_v0  ;;  %1109 = vmatpush3.bf16.msra.mxu1 (!%p163_p2), %v1184_v1  ;;  %vm1288_vm3 = vmor (!%p163_p2), %vm217_vm1, %vm218_vm2  ;;  %v1083_v31 = vld [vmem:[%s1421_s2] ss:$0 sm:$0xff] (!%p163_p2) }
   0x8   : > { %1118 = vmatprep.subr.bf16.mxu1 (!%p163_p2), %v1245_v2  ;;  %1138 = vmatprep.subr.bf16.mxu0 (!%p163_p2), %v1188_v3 }
   0xd   : > { %s1427_s16 = smov (!%p188_p3, %s1009_s16), 1 }
   0xe   : > { %s1172_s23 = smul.u32 72, %s1427_s16  ;;  %s1087_s7 = sshll.u32 %s1427_s16, 6 }
   0xf   : > { %s1398_s10 = scalar_lea.vmem %s1423_s4, %s1087_s7 }
  0x10   : > { %s1255_s28 = scalar_lea.vmem %s1419_s0, %s1172_s23 }
  0x11   : > { %v1182_v4 = vld [vmem:[%s1255_s28 + $0x8] ss:$8 sps:$4 sm:$0xff]   ;;  %v1183_v5 = vld [vmem:[%s1255_s28 + $0x18] ss:$8 sps:$4 sm:$0xff]   ;;  %v209_v9 = vld [vmem:[%s1255_s28 + $0x4] sm:$0x1] }
  0x12   : > { %1130 = vmatprep.mubr.msk.bf16.mxu0 %vm353_vm0, %v1182_v4  ;;  %v1185_v6 = vld [vmem:[%s1255_s28 + $0x28] ss:$8 sps:$4 sm:$0xff]   ;;  %v1263_v7 = vld [vmem:[%s1255_s28] sm:$0xf]  ;;  %v210_v10 = vld [vmem:[%s1255_s28 + $0xc] sm:$0x1] }
  0x13   : > { %1131 = vmatmul.mubr.msk.bf16.vlgmr.msra.gmra.mrb[0].mxu0 %vm353_vm0, %v1183_v5  ;;  %v1266_v8 = vld [vmem:[%s1255_s28 + $0x8] sm:$0xf]  ;;  %v221_v11 = vshrl.u32 %v1263_v7, 16  ;;  %v224_v12 = vshll.u32 %v1263_v7, 16  ;;  %v230_v13 = vshll.u32 %v209_v9, 16  ;;  %v244_v16 = vshll.u32 %v210_v10, 16 }
  0x14   : > { %1134 = vmatprep.mubr.msk.bf16.mxu0 %vm353_vm0, %v1185_v6  ;;  %v235_v14 = vshrl.u32 %v1266_v8, 16  ;;  %1139 = vmatpush3.bf16.msra.mxu0 %v1188_v3  ;;  %v238_v15 = vshll.u32 %v1266_v8, 16  ;;  %v1187_v21 = vld [vmem:[%s1255_s28 + $0x38] ss:$8 sps:$4 sm:$0xff]   ;;  %v1277_v24 = vld [vmem:[%s1255_s28 + $0x10] sm:$0xf] }
  0x15   : > { %v223_v17 = vrot.slane %v221_v11, 4  ;;  %v226_v18 = vrot.slane %v224_v12, 5  ;;  %v232_v19 = vrot.slane %v230_v13, 5  ;;  %v246_v23 = vrot.slane %v244_v16, 5  ;;  %v1280_v25 = vld [vmem:[%s1255_s28 + $0x18] sm:$0xf] }
  0x16   : > { %v237_v20 = vrot.slane %v235_v14, 4  ;;  %v240_v22 = vrot.slane %v238_v15, 5  ;;  %v211_v27 = vld [vmem:[%s1255_s28 + $0x14] sm:$0x1]  ;;  %v212_v28 = vld [vmem:[%s1255_s28 + $0x1c] sm:$0x1] }
  0x17   : > { %v227_v26 = vor.u32 %v226_v18, %v223_v17  ;;  %v249_v29 = vshrl.u32 %v1277_v24, 16  ;;  %v252_v30 = vshll.u32 %v1277_v24, 16  ;;  %v258_v33 = vshll.u32 %v211_v27, 16  ;;  %v1056_v36 = vld [vmem:[%s1255_s28 + $0x8] sm:$0xf] }
  0x18   : > { %v241_v32 = vor.u32 %v240_v22, %v237_v20  ;;  %v263_v34 = vshrl.u32 %v1280_v25, 16  ;;  %v266_v35 = vshll.u32 %v1280_v25, 16  ;;  %v272_v40 = vshll.u32 %v212_v28, 16  ;;  %v1057_v41 = vld [vmem:[%s1255_s28 + $0xc] sm:$0x1] }
  0x19   : > { %v228_v37 = vrot.slane %v227_v26, 4  ;;  %v251_v38 = vrot.slane %v249_v29, 4  ;;  %v254_v39 = vrot.slane %v252_v30, 5  ;;  %v260_v43 = vrot.slane %v258_v33, 5  ;;  %v1058_v46 = vld [vmem:[%s1255_s28 + $0x10] sm:$0xf] }
  0x1a   : > { %v242_v42 = vrot.slane %v241_v32, 4  ;;  %v265_v44 = vrot.slane %v263_v34, 4  ;;  %v268_v45 = vrot.slane %v266_v35, 5  ;;  %v274_v49 = vrot.slane %v272_v40, 5  ;;  %v1059_v53 = vld [vmem:[%s1255_s28 + $0x14] sm:$0x1] }
  0x1b   : > { %1135 = vmatmul.mubr.msk.bf16.gmra.mrb[4].mxu0 %vm353_vm0, %v1187_v21  ;;  %v233_v47 = vsel %vm1288_vm3, %v228_v37, %v232_v19  ;;  %v255_v48 = vor.u32 %v254_v39, %v251_v38  ;;  %v674_v50 = vshrl.u32 %v1056_v36, 16  ;;  %v677_v54 = vshll.u32 %v1056_v36, 16  ;;  %v1304_v56 = vld [vmem:[%s1255_s28 + $0x20] sm:$0xf]  ;;  %v213_v1 = vld [vmem:[%s1255_s28 + $0x24] sm:$0x1] }
  0x1c   : > { %v247_v51 = vsel %vm1288_vm3, %v242_v42, %v246_v23  ;;  %v269_v52 = vor.u32 %v268_v45, %v265_v44  ;;  %v683_v55 = vshll.u32 %v1057_v41, 16  ;;  %v688_v60 = vshrl.u32 %v1058_v46, 16  ;;  %v1311_v6 = vld [vmem:[%s1255_s28 + $0x28] sm:$0xf]  ;;  %v214_v13 = vld [vmem:[%s1255_s28 + $0x2c] sm:$0x1] }
  0x1d   : > { %v1019_v57 = vcombine.low %v233_v47, %v247_v51  ;;  %v256_v58 = vrot.slane %v255_v48, 4  ;;  %v676_v59 = vrot.slane %v674_v50, 4  ;;  %v679_v62 = vrot.slane %v677_v54, 5  ;;  %v1060_v15 = vld [vmem:[%s1255_s28 + $0x18] sm:$0xf] }
  0x1e   : > { %v270_v61 = vrot.slane %v269_v52, 4  ;;  %v685_v63 = vrot.slane %v683_v55, 5  ;;  %v691_v0 = vshll.u32 %v1058_v46, 16  ;;  %v690_v4 = vrot.slane %v688_v60, 4  ;;  %v1061_v26 = vld [vmem:[%s1255_s28 + $0x1c] sm:$0x1] }
  0x1f   : > { %1110 = vmatprep.mubr.msk.bf16.mxu1 %vm353_vm0, %v1019_v57  ;;  %v261_v3 = vsel %vm1288_vm3, %v256_v58, %v260_v43  ;;  %v697_v5 = vshll.u32 %v1059_v53, 16  ;;  %v277_v9 = vshrl.u32 %v1304_v56, 16  ;;  %v680_v11 = vor.u32 %v679_v62, %v676_v59  ;;  %v1062_v30 = vld [vmem:[%s1255_s28 + $0x20] sm:$0xf]  ;;  %v1063_v39 = vld [vmem:[%s1255_s28 + $0x24] sm:$0x1] }
  0x20   : > { %v275_v10 = vsel %vm1288_vm3, %v270_v61, %v274_v49  ;;  %v693_v12 = vrot.slane %v691_v0, 5  ;;  %v280_v14 = vshll.u32 %v1304_v56, 16  ;;  %v286_v19 = vshll.u32 %v213_v1, 16  ;;  %v1334_v50 = vld [vmem:[%s1255_s28 + $0x38] sm:$0xf] }
  0x21   : > { %v1020_v16 = vcombine.low %v261_v3, %v275_v10  ;;  %v699_v17 = vrot.slane %v697_v5, 5  ;;  %v279_v18 = vrot.slane %v277_v9, 4  ;;  %v681_v20 = vrot.slane %v680_v11, 4  ;;  %v215_v51 = vld [vmem:[%s1255_s28 + $0x34] sm:$0x1] }
  0x22   : > { %v694_v21 = vor.u32 %v693_v12, %v690_v4  ;;  %v282_v22 = vrot.slane %v280_v14, 5  ;;  %v291_v23 = vshrl.u32 %v1311_v6, 16  ;;  %v288_v27 = vrot.slane %v286_v19, 5  ;;  %v216_v62 = vld [vmem:[%s1255_s28 + $0x3c] sm:$0x1] }
  0x23   : > { %1111 = vmatmul.mubr.msk.bf16.vlgmr.msra.gmra.mrb[0].mxu1 %vm353_vm0, %v1020_v16  ;;  %v294_v28 = vshll.u32 %v1311_v6, 16  ;;  %v300_v29 = vshll.u32 %v214_v13, 16  ;;  %v702_v32 = vshrl.u32 %v1060_v15, 16  ;;  %v686_v33 = vsel %vm1288_vm3, %v681_v20, %v685_v63  ;;  %v1064_v10 = vld [vmem:[%s1255_s28 + $0x28] sm:$0xf] }
  0x24   : > { %1119 = vmatpush3.bf16.msra.mxu1 %v1245_v2  ;;  %v695_v34 = vrot.slane %v694_v21, 4  ;;  %v283_v35 = vor.u32 %v282_v22, %v279_v18  ;;  %v293_v36 = vrot.slane %v291_v23, 4  ;;  %v705_v41 = vshll.u32 %v1060_v15, 16  ;;  %v1331_v2 = vld [vmem:[%s1255_s28 + $0x30] sm:$0xf] }
  0x25   : > { %v296_v37 = vrot.slane %v294_v28, 5  ;;  %v302_v38 = vrot.slane %v300_v29, 5  ;;  %v704_v40 = vrot.slane %v702_v32, 4  ;;  %v711_v44 = vshll.u32 %v1061_v26, 16  ;;  %v1065_v11 = vld [vmem:[%s1255_s28 + $0x2c] sm:$0x1] }
  0x26   : > { %v700_v42 = vsel %vm1288_vm3, %v695_v34, %v699_v17  ;;  %v284_v43 = vrot.slane %v283_v35, 4  ;;  %v716_v45 = vshrl.u32 %v1062_v30, 16  ;;  %v707_v48 = vrot.slane %v705_v41, 5  ;;  %v1066_v15 = vld [vmem:[%s1255_s28 + $0x30] sm:$0xf] }
  0x27   : > { %v1074_v46 = vcombine.low %v686_v33, %v700_v42  ;;  %v297_v47 = vor.u32 %v296_v37, %v293_v36  ;;  %v719_v49 = vshll.u32 %v1062_v30, 16  ;;  %v713_v53 = vrot.slane %v711_v44, 5  ;;  %v1067_v22 = vld [vmem:[%s1255_s28 + $0x34] sm:$0x1]  ;;  %v1068_v30 = vld [vmem:[%s1255_s28 + $0x38] sm:$0xf] }
  0x28   : > { %v289_v52 = vsel %vm1288_vm3, %v284_v43, %v288_v27  ;;  %v718_v54 = vrot.slane %v716_v45, 4  ;;  %v725_v55 = vshll.u32 %v1063_v39, 16  ;;  %v708_v58 = vor.u32 %v707_v48, %v704_v40  ;;  %v1069_v36 = vld [vmem:[%s1255_s28 + $0x3c] sm:$0x1]  ;;  %v1070_v41 = vld [vmem:[%s1255_s28 + $0x40] sm:$0xf] }
  0x29   : > { %1140 = vmatprep.mubr.msk.bf16.mxu0 %vm353_vm0, %v1074_v46  ;;  %v298_v57 = vrot.slane %v297_v47, 4  ;;  %v721_v59 = vrot.slane %v719_v49, 5  ;;  %v305_v60 = vshrl.u32 %v1331_v2, 16  ;;  %v308_v63 = vshll.u32 %v1331_v2, 16 }
  0x2a   : > { %v727_v61 = vrot.slane %v725_v55, 5  ;;  %v314_v0 = vshll.u32 %v215_v51, 16  ;;  %v319_v1 = vshrl.u32 %v1334_v50, 16  ;;  %v709_v4 = vrot.slane %v708_v58, 4 }
  0x2b   : > { %v303_v3 = vsel %vm1288_vm3, %v298_v57, %v302_v38  ;;  %v722_v5 = vor.u32 %v721_v59, %v718_v54  ;;  %v307_v9 = vrot.slane %v305_v60, 4  ;;  %v310_v13 = vrot.slane %v308_v63, 5 }
  0x2c   : > { %v1021_v12 = vcombine.low %v289_v52, %v303_v3  ;;  %v321_v14 = vrot.slane %v319_v1, 4  ;;  %v1028_v16 = vcombine.low %v1263_v7, %v1266_v8  ;;  %v714_v17 = vsel %vm1288_vm3, %v709_v4, %v713_v53  ;;  %v1071_v52 = vld [vmem:[%s1255_s28 + $0x44] sm:$0x1] }
  0x2d   : > { %v723_v18 = vrot.slane %v722_v5, 4  ;;  %v322_v19 = vshll.u32 %v1334_v50, 16  ;;  %v328_v20 = vshll.u32 %v216_v62, 16  ;;  %v311_v21 = vor.u32 %v310_v13, %v307_v9 }
  0x2e   : > { %1114 = vmatprep.mubr.msk.bf16.mxu1 %vm353_vm0, %v1021_v12  ;;  %v730_v23 = vshrl.u32 %v1064_v10, 16  ;;  %v733_v26 = vshll.u32 %v1064_v10, 16  ;;  %v739_v27 = vshll.u32 %v1065_v11, 16  ;;  %v316_v7 = vrot.slane %v314_v0, 5 }
  0x2f   : > { %v728_v28 = vsel %vm1288_vm3, %v723_v18, %v727_v61  ;;  %v324_v8 = vrot.slane %v322_v19, 5  ;;  %v744_v29 = vshrl.u32 %v1066_v15, 16  ;;  %v312_v33 = vrot.slane %v311_v21, 4 }
  0x30   : > { %v1075_v32 = vcombine.low %v714_v17, %v728_v28  ;;  %v732_v34 = vrot.slane %v730_v23, 4  ;;  %v735_v35 = vrot.slane %v733_v26, 5  ;;  %v330_v38 = vrot.slane %v328_v20, 5  ;;  %v1084_v28 = vld [vmem:[%s1422_s3] ss:$0 sm:$0xff] }
  0x31   : > { %v325_v37 = vor.u32 %v324_v8, %v321_v14  ;;  %v746_v39 = vrot.slane %v744_v29, 4  ;;  %v747_v40 = vshll.u32 %v1066_v15, 16  ;;  %v741_v43 = vrot.slane %v739_v27, 5 }
  0x32   : > { %1141 = vmatmul.mubr.msk.bf16.vlgmr.msra.gmra.mrb[0].mxu0 %vm353_vm0, %v1075_v32  ;;  %v736_v42 = vor.u32 %v735_v35, %v732_v34  ;;  %v753_v44 = vshll.u32 %v1067_v22, 16  ;;  %v758_v45 = vshrl.u32 %v1068_v30, 16  ;;  %v317_v46 = vsel %vm1288_vm3, %v312_v33, %v316_v7 }
  0x33   : > { %v326_v47 = vrot.slane %v325_v37, 4  ;;  %v749_v48 = vrot.slane %v747_v40, 5  ;;  %v761_v49 = vshll.u32 %v1068_v30, 16  ;;  %v767_v54 = vshll.u32 %v1069_v36, 16 }
  0x34   : > { %v737_v51 = vrot.slane %v736_v42, 4  ;;  %v760_v53 = vrot.slane %v758_v45, 4  ;;  %v772_v55 = vshrl.u32 %v1070_v41, 16  ;;  %v755_v59 = vrot.slane %v753_v44, 5 }
  0x35   : > { %v331_v57 = vsel %vm1288_vm3, %v326_v47, %v330_v38  ;;  %v750_v58 = vor.u32 %v749_v48, %v746_v39  ;;  %v763_v60 = vrot.slane %v761_v49, 5  ;;  %v775_v63 = vshll.u32 %v1070_v41, 16 }
  0x36   : > { %v1022_v61 = vcombine.low %v317_v46, %v331_v57  ;;  %v774_v62 = vrot.slane %v772_v55, 4  ;;  %v742_v0 = vsel %vm1288_vm3, %v737_v51, %v741_v43  ;;  %v781_v4 = vshll.u32 %v1071_v52, 16 }
  0x37   : > { %v751_v1 = vrot.slane %v750_v58, 4  ;;  %v764_v3 = vor.u32 %v763_v60, %v760_v53  ;;  %v769_v5 = vrot.slane %v767_v54, 5  ;;  %v777_v9 = vrot.slane %v775_v63, 5 }
  0x38   : > { %1115 = vmatmul.mubr.msk.bf16.gmra.mrb[4].mxu1 %vm353_vm0, %v1022_v61  ;;  %v783_v14 = vrot.slane %v781_v4, 5  ;;  %v1029_v18 = vcombine.low %v1277_v24, %v1280_v25  ;;  %v1030_v19 = vcombine.low %v1304_v56, %v1311_v6  ;;  %v1031_v21 = vcombine.low %v1331_v2, %v1334_v50 }
  0x39   : > { %v756_v10 = vsel %vm1288_vm3, %v751_v1, %v755_v59  ;;  %1120 = vmatprep.mubr.msk.bf16.mxu1 %vm353_vm0, %v1028_v16  ;;  %v765_v11 = vrot.slane %v764_v3, 4  ;;  %v778_v13 = vor.u32 %v777_v9, %v774_v62 }
  0x3a   : > { %v1076_v12 = vcombine.low %v742_v0, %v756_v10 }
  0x3b   : > { %v770_v15 = vsel %vm1288_vm3, %v765_v11, %v769_v5  ;;  %v779_v17 = vrot.slane %v778_v13, 4 }
  0x3c   : > { %1144 = vmatprep.mubr.msk.bf16.mxu0 %vm353_vm0, %v1076_v12 }
  0x3d   : > { %v784_v20 = vsel %vm1288_vm3, %v779_v17, %v783_v14 }
  0x3e   : > { %v1077_v16 = vcombine.low %v770_v15, %v784_v20 }
  0x40   : > { %1121 = vmatmul.mubr.msk.bf16.vlgmr.msra.gmra.mrb[0].mxu1 %vm353_vm0, %v1029_v18  ;;  %1145 = vmatmul.mubr.msk.bf16.gmra.mrb[4].mxu0 %vm353_vm0, %v1077_v16 }
  0x41   : > { %1124 = vmatprep.mubr.msk.bf16.mxu1 %vm353_vm0, %v1030_v19 }
  0x48   : > { %1125 = vmatmul.mubr.msk.bf16.gmra.mrb[4].mxu1 %vm353_vm0, %v1031_v21 }
 0x105   : > { %v1142_v22 = vpop.f32.mrb[0].mxu0 }
 0x106   : > { %v852_v24 = vpop.f32.mrb[1].mxu0 }
 0x107   : > { %v1143_v25 = vpop.f32.mrb[2].mxu0 }
 0x108   : > { %v855_v56 = vpop.f32.mrb[3].mxu0 }
 0x113   : > { %v1122_v6 = vpop.f32.mrb[0].mxu1  ;;  %v1146_v23 = vpop.f32.mrb[4].mxu0 }
 0x114   : > { %v1148_v26 = vadd.f32 %v1142_v22, %v1122_v6  ;;  %v503_v27 = vpop.f32.mrb[1].mxu1  ;;  %v868_v2 = vpop.f32.mrb[5].mxu0 }
 0x115   : > { %v1149_v50 = vadd.f32 %v852_v24, %v503_v27  ;;  %v1123_v7 = vpop.f32.mrb[2].mxu1  ;;  %v1147_v29 = vpop.f32.mrb[6].mxu0 }
 0x116   : > { %v900_v8 = vmul.f32 %v1148_v26, %v1083_v31  ;;  %v1150_v30 = vadd.f32 %v1143_v25, %v1123_v7  ;;  %v506_v32 = vpop.f32.mrb[3].mxu1  ;;  %v871_v34 = vpop.f32.mrb[7].mxu0 }
 0x117   : > { %v898_v33 = vmul.f32 %v1149_v50, %v1083_v31  ;;  %v1151_v35 = vadd.f32 %v855_v56, %v506_v32 }
 0x118   : > { %v915_v36 = vadd.f32 %v1084_v28, %v900_v8  ;;  %v901_v37 = vmul.f32 %v1150_v30, %v1083_v31 }
 0x119   : > { %v913_v38 = vadd.f32 %v1084_v28, %v898_v33  ;;  %v899_v39 = vmul.f32 %v1151_v35, %v1083_v31 }
 0x11a   : > { %vm923_vm4 = vcmp.ge.f32.partialorder %v915_v36, 0.0  ;;  %v931_v40 = vmul.f32 0.2, %v915_v36  ;;  %v916_v41 = vadd.f32 %v1084_v28, %v901_v37 }
 0x11b   : > { %vm921_vm6 = vcmp.ge.f32.partialorder %v913_v38, 0.0  ;;  %v929_v42 = vmul.f32 0.2, %v913_v38  ;;  %v914_v43 = vadd.f32 %v1084_v28, %v899_v39  ;;  %v1126_v44 = vpop.f32.mrb[4].mxu1 }
 0x11c   : > { %v939_v45 = vsel %vm923_vm4, %v915_v36, %v931_v40  ;;  %vm924_vm7 = vcmp.ge.f32.partialorder %v916_v41, 0.0  ;;  %v932_v46 = vmul.f32 0.2, %v916_v41  ;;  %v1152_v47 = vadd.f32 %v1146_v23, %v1126_v44  ;;  %v519_v48 = vpop.f32.mrb[5].mxu1 }
 0x11d   : > { %948 = vst.msk [vmem:[%s1398_s10 + $0x10] sm:$0xff] %vm945_vm5, %v939_v45  ;;  %v937_v49 = vsel %vm921_vm6, %v913_v38, %v929_v42  ;;  %vm922_vm8 = vcmp.ge.f32.partialorder %v914_v43, 0.0  ;;  %v930_v51 = vmul.f32 0.2, %v914_v43  ;;  %v1153_v52 = vadd.f32 %v868_v2, %v519_v48  ;;  %v1127_v53 = vpop.f32.mrb[6].mxu1 }
 0x11e   : > { %946 = vst.msk [vmem:[%s1398_s10] sm:$0xff] %vm945_vm5, %v937_v49  ;;  %v940_v54 = vsel %vm924_vm7, %v916_v41, %v932_v46  ;;  %v904_v55 = vmul.f32 %v1152_v47, %v1083_v31  ;;  %v1154_v57 = vadd.f32 %v1147_v29, %v1127_v53  ;;  %v522_v58 = vpop.f32.mrb[7].mxu1 }
 0x11f   : > { %949 = vst.msk [vmem:[%s1398_s10 + $0x18] sm:$0xff] %vm945_vm5, %v940_v54  ;;  %v938_v59 = vsel %vm922_vm8, %v914_v43, %v930_v51  ;;  %v902_v60 = vmul.f32 %v1153_v52, %v1083_v31  ;;  %v1155_v61 = vadd.f32 %v871_v34, %v522_v58 }
 0x120   : > { %947 = vst.msk [vmem:[%s1398_s10 + $0x8] sm:$0xff] %vm945_vm5, %v938_v59  ;;  %v919_v62 = vadd.f32 %v1084_v28, %v904_v55  ;;  %v905_v63 = vmul.f32 %v1154_v57, %v1083_v31 }
 0x121   : > { %v917_v0 = vadd.f32 %v1084_v28, %v902_v60  ;;  %v903_v1 = vmul.f32 %v1155_v61, %v1083_v31 }
 0x122   : > { %vm927_vm9 = vcmp.ge.f32.partialorder %v919_v62, 0.0  ;;  %v935_v3 = vmul.f32 0.2, %v919_v62  ;;  %v920_v4 = vadd.f32 %v1084_v28, %v905_v63 }
 0x123   : > { %vm925_vm10 = vcmp.ge.f32.partialorder %v917_v0, 0.0  ;;  %v933_v5 = vmul.f32 0.2, %v917_v0  ;;  %v918_v9 = vadd.f32 %v1084_v28, %v903_v1 }
 0x124   : > { %v943_v10 = vsel %vm927_vm9, %v919_v62, %v935_v3  ;;  %vm928_vm11 = vcmp.ge.f32.partialorder %v920_v4, 0.0  ;;  %v936_v11 = vmul.f32 0.2, %v920_v4 }
 0x125   : > { %952 = vst.msk [vmem:[%s1398_s10 + $0x30] sm:$0xff] %vm945_vm5, %v943_v10  ;;  %v941_v12 = vsel %vm925_vm10, %v917_v0, %v933_v5  ;;  %vm926_vm12 = vcmp.ge.f32.partialorder %v918_v9, 0.0  ;;  %v934_v13 = vmul.f32 0.2, %v918_v9 }
 0x126   : > { %950 = vst.msk [vmem:[%s1398_s10 + $0x20] sm:$0xff] %vm945_vm5, %v941_v12  ;;  %v944_v14 = vsel %vm928_vm11, %v920_v4, %v936_v11 }
 0x127   : > { %953 = vst.msk [vmem:[%s1398_s10 + $0x38] sm:$0xff] %vm945_vm5, %v944_v14  ;;  %v942_v15 = vsel %vm926_vm12, %v918_v9, %v934_v13 }
 0x128   : > { %951 = vst.msk [vmem:[%s1398_s10 + $0x28] sm:$0xff] %vm945_vm5, %v942_v15 }
 0x129 PF: > { %s14_s15 = sadd.s32 1, %s1199_s15  }
 0x12a   : > { %p11_p4 = scmp.ge.s32.totalorder %s14_s15, 4  }
 0x12c   :  { %13 = sbr.rel (!%p11_p4) target bundleno = 1 (0x1), region = 70 }

</bundles_post_ra>
